<compile_context>
chip_gen: v5e
topology: v5e:2x2
jax: 0.10.0
libtpu: 0.0.40
codegen_flags: <defaults>
</compile_context>

<pallas_src>
import functools

import jax
import jax.numpy as jnp
from jax import lax
from jax.experimental import pallas as pl
from jax.experimental.pallas import tpu as pltpu


def _pick_tile(dim, pref, align):
    """Largest multiple-of-`align` divisor of `dim` that is <= pref.

    Returns the full dimension if dim <= pref or no aligned divisor exists;
    callers guard the resulting VMEM footprint explicitly (no silent blowups).
    """
    if dim <= pref:
        return dim
    t = (pref // align) * align
    while t >= align:
        if dim % t == 0:
            return t
        t -= align
    return dim


# ---------------------------------------------------------------------------
# Tiled matmul + bias (c_attn projection): grid over (M, N), full K resident.
# ---------------------------------------------------------------------------
def _linear_kernel(x_ref, w_ref, b_ref, o_ref):
    acc = jnp.dot(x_ref[...], w_ref[...], preferred_element_type=jnp.float32)
    o_ref[...] = (acc + b_ref[...].astype(jnp.float32)).astype(o_ref.dtype)


def _linear(x2d, w, b, *, tm_pref=512, tn_pref=512,
            vmem_budget=24 * 1024 * 1024):
    """out = x2d @ w + b. Full-K per step (no accumulator scratch / K axis)."""
    M, K = x2d.shape
    Kw, N = w.shape
    assert K == Kw
    itemsize = x2d.dtype.itemsize

    tm = _pick_tile(M, tm_pref, 8)
    tn = _pick_tile(N, tn_pref, 128)

    def est(tm_, tn_):
        # double-buffered x / w / bias / out tiles + f32 accumulation margin
        return 2 * itemsize * (tm_ * K + K * tn_ + tn_ + tm_ * tn_) + 4 * tm_ * tn_

    # Explicit VMEM guard: shrink tiles while they stay aligned divisors,
    # otherwise fail loudly instead of silently falling back to full dims.
    while est(tm, tn) > vmem_budget and tm % 16 == 0 and M % (tm // 2) == 0:
        tm //= 2
    while est(tm, tn) > vmem_budget and tn % 256 == 0 and N % (tn // 2) == 0:
        tn //= 2
    if est(tm, tn) > vmem_budget:
        # TODO(synk): add a padded / masked-remainder path (and K tiling for
        # very large K) instead of refusing awkward shapes.
        raise ValueError(
            f"_linear tiling ({tm}x{K})x({K}x{tn}) needs ~{est(tm, tn)} B of "
            f"VMEM (> {vmem_budget} B); pad M/N to tileable sizes.")

    return pl.pallas_call(
        _linear_kernel,
        out_shape=jax.ShapeDtypeStruct((M, N), x2d.dtype),
        grid_spec=pltpu.PrefetchScalarGridSpec(
            num_scalar_prefetch=0,
            grid=(M // tm, N // tn),
            in_specs=[
                pl.BlockSpec((tm, K), lambda i, j: (i, 0)),   # x tile
                pl.BlockSpec((K, tn), lambda i, j: (0, j)),   # W tile
                pl.BlockSpec((1, tn), lambda i, j: (0, j)),   # bias tile
            ],
            out_specs=pl.BlockSpec((tm, tn), lambda i, j: (i, j)),
        ),
        compiler_params=pltpu.CompilerParams(
            dimension_semantics=("parallel", "parallel"),
            vmem_limit_bytes=32 * 1024 * 1024,
        ),
    )(x2d, w, b)


# ---------------------------------------------------------------------------
# Causal flash attention over (B, H, T, D): lower-triangular blocks only,
# head-grouped, online softmax with VMEM-resident statistics.
# ---------------------------------------------------------------------------
def _flash_kernel(qi_tbl, ki_tbl, q_ref, k_ref, v_ref, o_ref,
                  m_scr, l_scr, acc_scr, *, tq, tkv):
    t = pl.program_id(2)
    qi = qi_tbl[t]
    ki = ki_tbl[t]

    @pl.when(ki == 0)
    def _():
        m_scr[...] = jnp.full(m_scr.shape, -jnp.inf, jnp.float32)
        l_scr[...] = jnp.zeros(l_scr.shape, jnp.float32)
        acc_scr[...] = jnp.zeros(acc_scr.shape, jnp.float32)

    # (hg, tq, D) x (hg, tkv, D) -> (hg, tq, tkv). Operands stay in the input
    # dtype (bf16-ready); accumulation in f32 on the MXU. The 1/sqrt(D) scale
    # is already folded into the Q projection weights.
    s = jnp.einsum("htd,hsd->hts", q_ref[...], k_ref[...],
                   preferred_element_type=jnp.float32)

    # Causal mask via global row/col indices: one cmp+select per vreg, only
    # bites on the diagonal tile (off-diagonal lower-tri tiles pass through).
    row = lax.broadcasted_iota(jnp.int32, s.shape, 1) + qi * tq
    col = lax.broadcasted_iota(jnp.int32, s.shape, 2) + ki * tkv
    s = jnp.where(col <= row, s, jnp.float32(-1e30))

    m_prev = m_scr[...]
    m_new = jnp.maximum(m_prev, jnp.max(s, axis=-1, keepdims=True))
    alpha = jnp.exp(m_prev - m_new)
    p = jnp.exp(s - m_new)
    l_scr[...] = alpha * l_scr[...] + jnp.sum(p, axis=-1, keepdims=True)
    acc_scr[...] = alpha * acc_scr[...] + jnp.einsum(
        "hts,hsd->htd", p.astype(v_ref.dtype), v_ref[...],
        preferred_element_type=jnp.float32)
    m_scr[...] = m_new

    # Lower-triangular enumeration: the diagonal tile is the last kv step of
    # this q tile -> finalize (exact division for the normalization).
    @pl.when(ki == qi)
    def _():
        o_ref[...] = (acc_scr[...] / l_scr[...]).astype(o_ref.dtype)


def _flash_attention(q, k, v, *, block_q=512, head_group=4):
    """Causal flash attention over (B, H, T, D); q is pre-scaled by 1/sqrt(D)."""
    B, H, T, D = q.shape
    tq = _pick_tile(T, block_q, 8)
    tkv = tq          # equal tiles -> diagonal block is always the last kv step
    nq = T // tq

    hg = min(head_group, H)
    while H % hg:
        hg -= 1

    # Explicit VMEM sanity guard (instead of a silent full-T fallback blowup).
    itemsize = q.dtype.itemsize
    per_step = (2 * hg * (tq + 2 * tkv) * D * itemsize   # q/k/v (double-buffered)
                + 2 * hg * tq * D * itemsize             # out   (double-buffered)
                + hg * tq * (D + 2) * 4                  # f32 scratch
                + 3 * hg * tq * tkv * 4)                 # f32 score working set
    if per_step > 28 * 1024 * 1024:
        raise ValueError(
            f"flash-attention tiles need ~{per_step} B of VMEM; reduce "
            "block_q / head_group or pad T to a tileable size.")

    # Lower-triangular block enumeration via scalar-prefetched index tables:
    # grid steps exist only for causally relevant (q-tile, kv-tile) pairs.
    qi_list, ki_list = [], []
    for qi in range(nq):
        for ki in range(qi + 1):
            qi_list.append(qi)
            ki_list.append(ki)
    qi_tbl = jnp.asarray(qi_list, dtype=jnp.int32)
    ki_tbl = jnp.asarray(ki_list, dtype=jnp.int32)
    n_blocks = len(qi_list)

    kernel = functools.partial(_flash_kernel, tq=tq, tkv=tkv)

    q_map = lambda b, g, t, qi_t, ki_t: (b, g, qi_t[t], 0)
    kv_map = lambda b, g, t, qi_t, ki_t: (b, g, ki_t[t], 0)

    return pl.pallas_call(
        kernel,
        out_shape=jax.ShapeDtypeStruct((B, H, T, D), q.dtype),
        grid_spec=pltpu.PrefetchScalarGridSpec(
            num_scalar_prefetch=2,
            grid=(B, H // hg, n_blocks),
            in_specs=[
                pl.BlockSpec((None, hg, tq, D), q_map),    # q tile (hg heads)
                pl.BlockSpec((None, hg, tkv, D), kv_map),  # k tile
                pl.BlockSpec((None, hg, tkv, D), kv_map),  # v tile
            ],
            out_specs=pl.BlockSpec((None, hg, tq, D), q_map),
            scratch_shapes=[
                pltpu.VMEM((hg, tq, 1), jnp.float32),   # running max
                pltpu.VMEM((hg, tq, 1), jnp.float32),   # running sum
                pltpu.VMEM((hg, tq, D), jnp.float32),   # output accumulator
            ],
        ),
        compiler_params=pltpu.CompilerParams(
            dimension_semantics=("parallel", "parallel", "arbitrary"),
            vmem_limit_bytes=32 * 1024 * 1024,
        ),
    )(qi_tbl, ki_tbl, q, k, v)


# ---------------------------------------------------------------------------
# c_proj fused with the head merge: consumes y directly in (B, H, T, D).
#   out[b, t, n] = sum_h sum_d y[b, h, t, d] * w_proj[h*D + d, n] + b_proj[n]
# ---------------------------------------------------------------------------
def _proj_merge_heads_kernel(y_ref, w_ref, b_ref, o_ref, acc_ref):
    h = pl.program_id(3)

    @pl.when(h == 0)
    def _():
        acc_ref[...] = jnp.zeros(acc_ref.shape, jnp.float32)

    acc_ref[...] += jnp.dot(y_ref[...], w_ref[...],
                            preferred_element_type=jnp.float32)

    @pl.when(h == pl.num_programs(3) - 1)
    def _():
        o_ref[...] = (acc_ref[...] + b_ref[...].astype(jnp.float32)
                      ).astype(o_ref.dtype)


def _proj_merge_heads(y, w_proj, b_proj, *, tm_pref=512, tn_pref=512):
    B, H, T, D = y.shape
    N = w_proj.shape[1]
    assert w_proj.shape[0] == H * D

    tm = _pick_tile(T, tm_pref, 8)
    tn = _pick_tile(N, tn_pref, 128)
    w3 = w_proj.reshape(H, D, N)   # per-head (D, N) slabs of W

    # TODO(synk): group 2-4 heads per step here too (per-head contraction
    # depth is only D), analogous to the flash-attention head grouping.
    return pl.pallas_call(
        _proj_merge_heads_kernel,
        out_shape=jax.ShapeDtypeStruct((B, T, N), y.dtype),
        grid_spec=pltpu.PrefetchScalarGridSpec(
            num_scalar_prefetch=0,
            grid=(B, T // tm, N // tn, H),
            in_specs=[
                pl.BlockSpec((None, None, tm, D), lambda b, i, j, h: (b, h, i, 0)),
                pl.BlockSpec((None, D, tn), lambda b, i, j, h: (h, 0, j)),
                pl.BlockSpec((1, tn), lambda b, i, j, h: (0, j)),
            ],
            out_specs=pl.BlockSpec((None, tm, tn), lambda b, i, j, h: (b, i, j)),
            scratch_shapes=[pltpu.VMEM((tm, tn), jnp.float32)],
        ),
        compiler_params=pltpu.CompilerParams(
            dimension_semantics=("parallel", "parallel", "parallel", "arbitrary"),
            vmem_limit_bytes=32 * 1024 * 1024,
        ),
    )(y, w3, b_proj)


# ---------------------------------------------------------------------------
# Full module forward
# ---------------------------------------------------------------------------
def causal_self_attention(x, w_qkv, b_qkv, w_proj, b_proj, n_head):
    B, T, C = x.shape
    assert C % n_head == 0
    D = C // n_head

    # Fold 1/sqrt(D) into the Q columns of the qkv projection so the flash
    # kernel never re-scales the resident q tile per kv step. (With constant
    # weights this is one-time preprocessing; here it is a tiny elementwise op.)
    scale = 1.0 / float(D) ** 0.5
    col_scale = jnp.concatenate(
        [jnp.full((C,), scale, dtype=w_qkv.dtype),
         jnp.ones((2 * C,), dtype=w_qkv.dtype)])
    w_qkv_s = w_qkv * col_scale[None, :]
    b_qkv_s = b_qkv * col_scale[None, :]

    # qkv projection: (B*T, C) @ (C, 3C) + b
    qkv = _linear(x.reshape(B * T, C), w_qkv_s, b_qkv_s)          # (B*T, 3C)

    # Head split is wrapper-level layout plumbing (XLA), not in-kernel XLU.
    # TODO(synk): fuse this split/transpose into the qkv projection's output
    # BlockSpec the same way the head merge is fused into c_proj below.
    qkv = jnp.transpose(qkv.reshape(B, T, 3, n_head, D), (2, 0, 3, 1, 4))
    q, k, v = qkv[0], qkv[1], qkv[2]                              # (B, H, T, D)

    # Causal flash attention: lower-triangular blocks only, head-grouped.
    y = _flash_attention(q, k, v)                                 # (B, H, T, D)

    # Output projection fused with the head merge: no (B,H,T,D)->(B,T,C)
    # transpose round-trip through HBM.
    return _proj_merge_heads(y, w_proj, b_proj)                   # (B, T, C)


# ---------------------------------------------------------------------------
# Pure-JAX reference (PyTorch semantics)
# ---------------------------------------------------------------------------
def _reference(x, w_qkv, b_qkv, w_proj, b_proj, n_head):
    B, T, C = x.shape
    D = C // n_head
    qkv = x @ w_qkv + b_qkv
    q, k, v = jnp.split(qkv, 3, axis=-1)
    q = q.reshape(B, T, n_head, D).transpose(0, 2, 1, 3)
    k = k.reshape(B, T, n_head, D).transpose(0, 2, 1, 3)
    v = v.reshape(B, T, n_head, D).transpose(0, 2, 1, 3)
    scores = jnp.einsum('bhtd,bhsd->bhts', q, k) / jnp.sqrt(jnp.float32(D))
    mask = jnp.tril(jnp.ones((T, T), dtype=bool))
    scores = jnp.where(mask[None, None], scores, -1e30)
    p = jax.nn.softmax(scores, axis=-1)
    y = jnp.einsum('bhts,bhsd->bhtd', p, v)
    y = y.transpose(0, 2, 1, 3).reshape(B, T, C)
    return y @ w_proj + b_proj


if __name__ == "__main__":
    # Small config consistent with the module: n_embd % n_head == 0.
    B, T, C, n_head = 2, 8, 32, 4

    key = jax.random.PRNGKey(0)
    kx, k1, k2, k3, k4 = jax.random.split(key, 5)

    x = jax.random.normal(kx, (B, T, C), dtype=jnp.float32)

    # GPT-2-ish deterministic init; nonzero biases to exercise the bias path.
    w_qkv = 0.02 * jax.random.normal(k1, (C, 3 * C), dtype=jnp.float32)
    b_qkv = 0.02 * jax.random.normal(k3, (1, 3 * C), dtype=jnp.float32)
    w_proj = (0.02 / jnp.sqrt(2.0)) * jax.random.normal(
        k2, (C, C), dtype=jnp.float32)
    b_proj = 0.02 * jax.random.normal(k4, (1, C), dtype=jnp.float32)

    attn = jax.jit(functools.partial(causal_self_attention, n_head=n_head))
    y = jax.block_until_ready(attn(x, w_qkv, b_qkv, w_proj, b_proj))

    y_ref = _reference(x, w_qkv, b_qkv, w_proj, b_proj, n_head)
    assert jnp.allclose(y, y_ref, atol=2e-3, rtol=2e-3), "mismatch vs reference"

    print("KERNEL_OK")
</pallas_src>

<mosaic_0001>
module attributes {stable_mosaic.version = 11 : i64} {
  func.func @_linear_kernel(%arg0: i32, %arg1: i32, %arg2: memref<16x32xf32, #tpu.memory_space<vmem>>, %arg3: memref<32x96xf32, #tpu.memory_space<vmem>>, %arg4: memref<1x96xf32, #tpu.memory_space<vmem>>, %arg5: memref<16x96xf32, #tpu.memory_space<vmem>>) attributes {dimension_semantics = [#tpu.dimension_semantics<parallel>, #tpu.dimension_semantics<parallel>], iteration_bounds = array<i64: 1, 1>, scalar_prefetch = 0 : i64, scratch_operands = 0 : i64, tpu.core_type = #tpu.core_type<tc>, window_params = [{transform_indices = @transform_0, window_bounds = array<i64: 16, 32>}, {transform_indices = @transform_1, window_bounds = array<i64: 32, 96>}, {transform_indices = @transform_2, window_bounds = array<i64: 1, 96>}, {transform_indices = @transform_3, window_bounds = array<i64: 16, 96>}]} {
    %c0 = arith.constant 0 : index
    %c0_0 = arith.constant 0 : index
    %0 = vector.load %arg2[%c0, %c0_0] : memref<16x32xf32, #tpu.memory_space<vmem>>, vector<16x32xf32>
    %c0_1 = arith.constant 0 : index
    %c0_2 = arith.constant 0 : index
    %1 = vector.load %arg3[%c0_1, %c0_2] : memref<32x96xf32, #tpu.memory_space<vmem>>, vector<32x96xf32>
    %cst = arith.constant dense<0.000000e+00> : vector<16x96xf32>
    %2 = tpu.matmul %0, %1, %cst {dimension_numbers = #tpu.dot_dimension_numbers<[1], [0], [0], [1], [0, 0, 1, 1], [], []>} : vector<16x32xf32>, vector<32x96xf32>, vector<16x96xf32> -> vector<16x96xf32>
    %c0_3 = arith.constant 0 : index
    %c0_4 = arith.constant 0 : index
    %3 = vector.load %arg4[%c0_3, %c0_4] : memref<1x96xf32, #tpu.memory_space<vmem>>, vector<1x96xf32>
    %4 = vector.broadcast %3 : vector<1x96xf32> to vector<16x96xf32>
    %5 = arith.addf %2, %4 : vector<16x96xf32>
    %c0_5 = arith.constant 0 : index
    %c0_6 = arith.constant 0 : index
    %6 = vector.load %arg5[%c0_5, %c0_6] : memref<16x96xf32, #tpu.memory_space<vmem>>, vector<16x96xf32>
    tpu.vector_store %arg5[%c0_5, %c0_6], %5 {strides = array<i32>} : memref<16x96xf32, #tpu.memory_space<vmem>>, vector<16x96xf32>,
    return
  }
  func.func @transform_0(%arg0: i32, %arg1: i32) -> (i32, i32) {
    %c0_i32 = arith.constant 0 : i32
    %c0_i32_0 = arith.constant 0 : i32
    return %arg0, %c0_i32 : i32, i32
  }
  func.func @transform_1(%arg0: i32, %arg1: i32) -> (i32, i32) {
    %c0_i32 = arith.constant 0 : i32
    %c0_i32_0 = arith.constant 0 : i32
    return %c0_i32, %arg1 : i32, i32
  }
  func.func @transform_2(%arg0: i32, %arg1: i32) -> (i32, i32) {
    %c0_i32 = arith.constant 0 : i32
    %c0_i32_0 = arith.constant 0 : i32
    return %c0_i32, %arg1 : i32, i32
  }
  func.func @transform_3(%arg0: i32, %arg1: i32) -> (i32, i32) {
    %c0_i32 = arith.constant 0 : i32
    return %arg0, %arg1 : i32, i32
  }
}

module attributes {stable_mosaic.version = 11 : i64} {
  func.func @_flash_kernel(%arg0: i32, %arg1: i32, %arg2: i32, %arg3: memref<1xi32, #tpu.memory_space<smem>>, %arg4: memref<1xi32, #tpu.memory_space<smem>>, %arg5: memref<1x4x8x8xf32, #tpu.memory_space<vmem>>, %arg6: memref<1x4x8x8xf32, #tpu.memory_space<vmem>>, %arg7: memref<1x4x8x8xf32, #tpu.memory_space<vmem>>, %arg8: memref<1x4x8x8xf32, #tpu.memory_space<vmem>>, %arg9: memref<4x8x1xf32, #tpu.memory_space<vmem>>, %arg10: memref<4x8x1xf32, #tpu.memory_space<vmem>>, %arg11: memref<4x8x8xf32, #tpu.memory_space<vmem>>) attributes {dimension_semantics = [#tpu.dimension_semantics<parallel>, #tpu.dimension_semantics<parallel>, #tpu.dimension_semantics<arbitrary>], iteration_bounds = array<i64: 2, 1, 1>, scalar_prefetch = 2 : i64, scratch_operands = 3 : i64, tpu.core_type = #tpu.core_type<tc>, window_params = [{transform_indices = @transform_0, window_bounds = array<i64: 1, 4, 8, 8>}, {transform_indices = @transform_1, window_bounds = array<i64: 1, 4, 8, 8>}, {transform_indices = @transform_2, window_bounds = array<i64: 1, 4, 8, 8>}, {transform_indices = @transform_3, window_bounds = array<i64: 1, 4, 8, 8>}]} {
    %0 = arith.index_cast %arg2 : i32 to index
    %1 = memref.load %arg3[%0] : memref<1xi32, #tpu.memory_space<smem>>
    %2 = arith.index_cast %arg2 : i32 to index
    %3 = memref.load %arg4[%2] : memref<1xi32, #tpu.memory_space<smem>>
    %c0_i32 = arith.constant 0 : i32
    %4 = arith.cmpi eq, %3, %c0_i32 : i32
    %5 = arith.extui %4 : i1 to i32
    %c0_i32_0 = arith.constant 0 : i32
    %6 = arith.cmpi ne, %5, %c0_i32_0 : i32
    scf.if %6 {
      %cst_36 = arith.constant 0xFF800000 : f32
      %50 = vector.broadcast %cst_36 : f32 to vector<4x8x1xf32>
      %c0_37 = arith.constant 0 : index
      %c0_38 = arith.constant 0 : index
      %c0_39 = arith.constant 0 : index
      %51 = vector.load %arg9[%c0_37, %c0_38, %c0_39] : memref<4x8x1xf32, #tpu.memory_space<vmem>>, vector<4x8x1xf32>
      tpu.vector_store %arg9[%c0_37, %c0_38, %c0_39], %50 {strides = array<i32>} : memref<4x8x1xf32, #tpu.memory_space<vmem>>, vector<4x8x1xf32>,
      %cst_40 = arith.constant 0.000000e+00 : f32
      %52 = vector.broadcast %cst_40 : f32 to vector<4x8x1xf32>
      %c0_41 = arith.constant 0 : index
      %c0_42 = arith.constant 0 : index
      %c0_43 = arith.constant 0 : index
      %53 = vector.load %arg10[%c0_41, %c0_42, %c0_43] : memref<4x8x1xf32, #tpu.memory_space<vmem>>, vector<4x8x1xf32>
      tpu.vector_store %arg10[%c0_41, %c0_42, %c0_43], %52 {strides = array<i32>} : memref<4x8x1xf32, #tpu.memory_space<vmem>>, vector<4x8x1xf32>,
      %cst_44 = arith.constant 0.000000e+00 : f32
      %54 = vector.broadcast %cst_44 : f32 to vector<4x8x8xf32>
      %c0_45 = arith.constant 0 : index
      %c0_46 = arith.constant 0 : index
      %c0_47 = arith.constant 0 : index
      %55 = vector.load %arg11[%c0_45, %c0_46, %c0_47] : memref<4x8x8xf32, #tpu.memory_space<vmem>>, vector<4x8x8xf32>
      tpu.vector_store %arg11[%c0_45, %c0_46, %c0_47], %54 {strides = array<i32>} : memref<4x8x8xf32, #tpu.memory_space<vmem>>, vector<4x8x8xf32>,
    } else {
    }
    %c0 = arith.constant 0 : index
    %c0_1 = arith.constant 0 : index
    %c0_2 = arith.constant 0 : index
    %c0_3 = arith.constant 0 : index
    %7 = vector.load %arg5[%c0, %c0_1, %c0_2, %c0_3] : memref<1x4x8x8xf32, #tpu.memory_space<vmem>>, vector<1x4x8x8xf32>
    %8 = vector.shape_cast %7 : vector<1x4x8x8xf32> to vector<4x8x8xf32>
    %c0_4 = arith.constant 0 : index
    %c0_5 = arith.constant 0 : index
    %c0_6 = arith.constant 0 : index
    %c0_7 = arith.constant 0 : index
    %9 = vector.load %arg6[%c0_4, %c0_5, %c0_6, %c0_7] : memref<1x4x8x8xf32, #tpu.memory_space<vmem>>, vector<1x4x8x8xf32>
    %10 = vector.shape_cast %9 : vector<1x4x8x8xf32> to vector<4x8x8xf32>
    "tpu.trace_start"() <{level = 10 : i32, message = "htd,hsd->hts"}> : () -> ()
    %cst = arith.constant dense<0.000000e+00> : vector<4x8x8xf32>
    %11 = tpu.matmul %8, %10, %cst {dimension_numbers = #tpu.dot_dimension_numbers<[2], [2], [1], [1], [0, 0, 0, 1, 1, 1], [0], [0]>} : vector<4x8x8xf32>, vector<4x8x8xf32>, vector<4x8x8xf32> -> vector<4x8x8xf32>
    "tpu.trace_stop"() : () -> ()
    %12 = tpu.iota {dimensions = array<i32: 1>} : vector<4x8x8xi32>
    %c8_i32 = arith.constant 8 : i32
    %13 = arith.muli %1, %c8_i32 : i32
    %14 = vector.broadcast %13 : i32 to vector<4x8x8xi32>
    %15 = arith.addi %12, %14 : vector<4x8x8xi32>
    %16 = tpu.iota {dimensions = array<i32: 2>} : vector<4x8x8xi32>
    %c8_i32_8 = arith.constant 8 : i32
    %17 = arith.muli %3, %c8_i32_8 : i32
    %18 = vector.broadcast %17 : i32 to vector<4x8x8xi32>
    %19 = arith.addi %16, %18 : vector<4x8x8xi32>
    %20 = arith.cmpi sle, %19, %15 : vector<4x8x8xi32>
    %cst_9 = arith.constant -1.000000e+30 : f32
    %21 = vector.broadcast %cst_9 : f32 to vector<4x8x8xf32>
    %22 = arith.select %20, %11, %21 : vector<4x8x8xi1>, vector<4x8x8xf32>
    %c0_10 = arith.constant 0 : index
    %c0_11 = arith.constant 0 : index
    %c0_12 = arith.constant 0 : index
    %23 = vector.load %arg9[%c0_10, %c0_11, %c0_12] : memref<4x8x1xf32, #tpu.memory_space<vmem>>, vector<4x8x1xf32>
    %cst_13 = arith.constant dense<0xFF800000> : vector<4x8xf32>
    %24 = vector.multi_reduction <maximumf>, %22, %cst_13 [2] : vector<4x8x8xf32> to vector<4x8xf32>
    %25 = vector.shape_cast %24 : vector<4x8xf32> to vector<4x8x1xf32>
    %26 = arith.maximumf %23, %25 : vector<4x8x1xf32>
    %27 = arith.subf %23, %26 : vector<4x8x1xf32>
    %28 = math.exp %27 : vector<4x8x1xf32>
    %29 = vector.broadcast %26 : vector<4x8x1xf32> to vector<4x8x8xf32>
    %30 = arith.subf %22, %29 : vector<4x8x8xf32>
    %31 = math.exp %30 : vector<4x8x8xf32>
    %c0_14 = arith.constant 0 : index
    %c0_15 = arith.constant 0 : index
    %c0_16 = arith.constant 0 : index
    %32 = vector.load %arg10[%c0_14, %c0_15, %c0_16] : memref<4x8x1xf32, #tpu.memory_space<vmem>>, vector<4x8x1xf32>
    %33 = arith.mulf %28, %32 : vector<4x8x1xf32>
    %cst_17 = arith.constant dense<0.000000e+00> : vector<4x8xf32>
    %34 = vector.multi_reduction <add>, %31, %cst_17 [2] : vector<4x8x8xf32> to vector<4x8xf32>
    %35 = vector.shape_cast %34 : vector<4x8xf32> to vector<4x8x1xf32>
    %36 = arith.addf %33, %35 : vector<4x8x1xf32>
    %c0_18 = arith.constant 0 : index
    %c0_19 = arith.constant 0 : index
    %c0_20 = arith.constant 0 : index
    %37 = vector.load %arg10[%c0_18, %c0_19, %c0_20] : memref<4x8x1xf32, #tpu.memory_space<vmem>>, vector<4x8x1xf32>
    tpu.vector_store %arg10[%c0_18, %c0_19, %c0_20], %36 {strides = array<i32>} : memref<4x8x1xf32, #tpu.memory_space<vmem>>, vector<4x8x1xf32>,
    %c0_21 = arith.constant 0 : index
    %c0_22 = arith.constant 0 : index
    %c0_23 = arith.constant 0 : index
    %38 = vector.load %arg11[%c0_21, %c0_22, %c0_23] : memref<4x8x8xf32, #tpu.memory_space<vmem>>, vector<4x8x8xf32>
    %39 = vector.broadcast %28 : vector<4x8x1xf32> to vector<4x8x8xf32>
    %40 = arith.mulf %39, %38 : vector<4x8x8xf32>
    %c0_24 = arith.constant 0 : index
    %c0_25 = arith.constant 0 : index
    %c0_26 = arith.constant 0 : index
    %c0_27 = arith.constant 0 : index
    %41 = vector.load %arg7[%c0_24, %c0_25, %c0_26, %c0_27] : memref<1x4x8x8xf32, #tpu.memory_space<vmem>>, vector<1x4x8x8xf32>
    %42 = vector.shape_cast %41 : vector<1x4x8x8xf32> to vector<4x8x8xf32>
    "tpu.trace_start"() <{level = 10 : i32, message = "hts,hsd->htd"}> : () -> ()
    %cst_28 = arith.constant dense<0.000000e+00> : vector<4x8x8xf32>
    %43 = tpu.matmul %31, %42, %cst_28 {dimension_numbers = #tpu.dot_dimension_numbers<[2], [1], [1], [2], [0, 0, 0, 1, 1, 2], [0], [0]>} : vector<4x8x8xf32>, vector<4x8x8xf32>, vector<4x8x8xf32> -> vector<4x8x8xf32>
    "tpu.trace_stop"() : () -> ()
    %44 = arith.addf %40, %43 : vector<4x8x8xf32>
    %c0_29 = arith.constant 0 : index
    %c0_30 = arith.constant 0 : index
    %c0_31 = arith.constant 0 : index
    %45 = vector.load %arg11[%c0_29, %c0_30, %c0_31] : memref<4x8x8xf32, #tpu.memory_space<vmem>>, vector<4x8x8xf32>
    tpu.vector_store %arg11[%c0_29, %c0_30, %c0_31], %44 {strides = array<i32>} : memref<4x8x8xf32, #tpu.memory_space<vmem>>, vector<4x8x8xf32>,
    %c0_32 = arith.constant 0 : index
    %c0_33 = arith.constant 0 : index
    %c0_34 = arith.constant 0 : index
    %46 = vector.load %arg9[%c0_32, %c0_33, %c0_34] : memref<4x8x1xf32, #tpu.memory_space<vmem>>, vector<4x8x1xf32>
    tpu.vector_store %arg9[%c0_32, %c0_33, %c0_34], %26 {strides = array<i32>} : memref<4x8x1xf32, #tpu.memory_space<vmem>>, vector<4x8x1xf32>,
    %47 = arith.cmpi eq, %3, %1 : i32
    %48 = arith.extui %47 : i1 to i32
    %c0_i32_35 = arith.constant 0 : i32
    %49 = arith.cmpi ne, %48, %c0_i32_35 : i32
    scf.if %49 {
      %c0_36 = arith.constant 0 : index
      %c0_37 = arith.constant 0 : index
      %c0_38 = arith.constant 0 : index
      %50 = vector.load %arg11[%c0_36, %c0_37, %c0_38] : memref<4x8x8xf32, #tpu.memory_space<vmem>>, vector<4x8x8xf32>
      %c0_39 = arith.constant 0 : index
      %c0_40 = arith.constant 0 : index
      %c0_41 = arith.constant 0 : index
      %51 = vector.load %arg10[%c0_39, %c0_40, %c0_41] : memref<4x8x1xf32, #tpu.memory_space<vmem>>, vector<4x8x1xf32>
      %52 = vector.broadcast %51 : vector<4x8x1xf32> to vector<4x8x8xf32>
      %53 = arith.divf %50, %52 : vector<4x8x8xf32>
      %c0_42 = arith.constant 0 : index
      %c0_43 = arith.constant 0 : index
      %c0_44 = arith.constant 0 : index
      %c0_45 = arith.constant 0 : index
      %54 = vector.load %arg8[%c0_42, %c0_43, %c0_44, %c0_45] : memref<1x4x8x8xf32, #tpu.memory_space<vmem>>, vector<1x4x8x8xf32>
      %55 = vector.shape_cast %54 : vector<1x4x8x8xf32> to vector<4x8x8xf32>
      %56 = vector.shape_cast %53 : vector<4x8x8xf32> to vector<1x4x8x8xf32>
      tpu.vector_store %arg8[%c0_42, %c0_43, %c0_44, %c0_45], %56 {strides = array<i32>} : memref<1x4x8x8xf32, #tpu.memory_space<vmem>>, vector<1x4x8x8xf32>,
    } else {
    }
    return
  }
  func.func @transform_0(%arg0: i32, %arg1: i32, %arg2: i32, %arg3: memref<1xi32, #tpu.memory_space<smem>>, %arg4: memref<1xi32, #tpu.memory_space<smem>>) -> (i32, i32, i32, i32) {
    %0 = arith.index_cast %arg2 : i32 to index
    %1 = memref.load %arg3[%0] : memref<1xi32, #tpu.memory_space<smem>>
    %c0_i32 = arith.constant 0 : i32
    %c0_i32_0 = arith.constant 0 : i32
    return %arg0, %arg1, %1, %c0_i32 : i32, i32, i32, i32
  }
  func.func @transform_1(%arg0: i32, %arg1: i32, %arg2: i32, %arg3: memref<1xi32, #tpu.memory_space<smem>>, %arg4: memref<1xi32, #tpu.memory_space<smem>>) -> (i32, i32, i32, i32) {
    %0 = arith.index_cast %arg2 : i32 to index
    %1 = memref.load %arg4[%0] : memref<1xi32, #tpu.memory_space<smem>>
    %c0_i32 = arith.constant 0 : i32
    %c0_i32_0 = arith.constant 0 : i32
    return %arg0, %arg1, %1, %c0_i32 : i32, i32, i32, i32
  }
  func.func @transform_2(%arg0: i32, %arg1: i32, %arg2: i32, %arg3: memref<1xi32, #tpu.memory_space<smem>>, %arg4: memref<1xi32, #tpu.memory_space<smem>>) -> (i32, i32, i32, i32) {
    %0 = arith.index_cast %arg2 : i32 to index
    %1 = memref.load %arg4[%0] : memref<1xi32, #tpu.memory_space<smem>>
    %c0_i32 = arith.constant 0 : i32
    %c0_i32_0 = arith.constant 0 : i32
    return %arg0, %arg1, %1, %c0_i32 : i32, i32, i32, i32
  }
  func.func @transform_3(%arg0: i32, %arg1: i32, %arg2: i32, %arg3: memref<1xi32, #tpu.memory_space<smem>>, %arg4: memref<1xi32, #tpu.memory_space<smem>>) -> (i32, i32, i32, i32) {
    %0 = arith.index_cast %arg2 : i32 to index
    %1 = memref.load %arg3[%0] : memref<1xi32, #tpu.memory_space<smem>>
    %c0_i32 = arith.constant 0 : i32
    %c0_i32_0 = arith.constant 0 : i32
    return %arg0, %arg1, %1, %c0_i32 : i32, i32, i32, i32
  }
}

module attributes {stable_mosaic.version = 11 : i64} {
  func.func @_proj_merge_heads_kernel(%arg0: i32, %arg1: i32, %arg2: i32, %arg3: i32, %arg4: memref<1x1x8x8xf32, #tpu.memory_space<vmem>>, %arg5: memref<1x8x32xf32, #tpu.memory_space<vmem>>, %arg6: memref<1x32xf32, #tpu.memory_space<vmem>>, %arg7: memref<1x8x32xf32, #tpu.memory_space<vmem>>, %arg8: memref<8x32xf32, #tpu.memory_space<vmem>>) attributes {dimension_semantics = [#tpu.dimension_semantics<parallel>, #tpu.dimension_semantics<parallel>, #tpu.dimension_semantics<parallel>, #tpu.dimension_semantics<arbitrary>], iteration_bounds = array<i64: 2, 1, 1, 4>, scalar_prefetch = 0 : i64, scratch_operands = 1 : i64, tpu.core_type = #tpu.core_type<tc>, window_params = [{transform_indices = @transform_0, window_bounds = array<i64: 1, 1, 8, 8>}, {transform_indices = @transform_1, window_bounds = array<i64: 1, 8, 32>}, {transform_indices = @transform_2, window_bounds = array<i64: 1, 32>}, {transform_indices = @transform_3, window_bounds = array<i64: 1, 8, 32>}]} {
    %c0_i32 = arith.constant 0 : i32
    %0 = arith.cmpi eq, %arg3, %c0_i32 : i32
    %1 = arith.extui %0 : i1 to i32
    %c0_i32_0 = arith.constant 0 : i32
    %2 = arith.cmpi ne, %1, %c0_i32_0 : i32
    scf.if %2 {
      %cst_12 = arith.constant 0.000000e+00 : f32
      %14 = vector.broadcast %cst_12 : f32 to vector<8x32xf32>
      %c0_13 = arith.constant 0 : index
      %c0_14 = arith.constant 0 : index
      %15 = vector.load %arg8[%c0_13, %c0_14] : memref<8x32xf32, #tpu.memory_space<vmem>>, vector<8x32xf32>
      tpu.vector_store %arg8[%c0_13, %c0_14], %14 {strides = array<i32>} : memref<8x32xf32, #tpu.memory_space<vmem>>, vector<8x32xf32>,
    } else {
    }
    %c0 = arith.constant 0 : index
    %c0_1 = arith.constant 0 : index
    %3 = vector.load %arg8[%c0, %c0_1] : memref<8x32xf32, #tpu.memory_space<vmem>>, vector<8x32xf32>
    %c0_2 = arith.constant 0 : index
    %c0_3 = arith.constant 0 : index
    %c0_4 = arith.constant 0 : index
    %c0_5 = arith.constant 0 : index
    %4 = vector.load %arg4[%c0_2, %c0_3, %c0_4, %c0_5] : memref<1x1x8x8xf32, #tpu.memory_space<vmem>>, vector<1x1x8x8xf32>
    %5 = vector.shape_cast %4 : vector<1x1x8x8xf32> to vector<8x8xf32>
    %c0_6 = arith.constant 0 : index
    %c0_7 = arith.constant 0 : index
    %c0_8 = arith.constant 0 : index
    %6 = vector.load %arg5[%c0_6, %c0_7, %c0_8] : memref<1x8x32xf32, #tpu.memory_space<vmem>>, vector<1x8x32xf32>
    %7 = vector.shape_cast %6 : vector<1x8x32xf32> to vector<8x32xf32>
    %cst = arith.constant dense<0.000000e+00> : vector<8x32xf32>
    %8 = tpu.matmul %5, %7, %cst {dimension_numbers = #tpu.dot_dimension_numbers<[1], [0], [0], [1], [0, 0, 1, 1], [], []>} : vector<8x8xf32>, vector<8x32xf32>, vector<8x32xf32> -> vector<8x32xf32>
    %9 = arith.addf %3, %8 : vector<8x32xf32>
    %c0_9 = arith.constant 0 : index
    %c0_10 = arith.constant 0 : index
    %10 = vector.load %arg8[%c0_9, %c0_10] : memref<8x32xf32, #tpu.memory_space<vmem>>, vector<8x32xf32>
    tpu.vector_store %arg8[%c0_9, %c0_10], %9 {strides = array<i32>} : memref<8x32xf32, #tpu.memory_space<vmem>>, vector<8x32xf32>,
    %c3_i32 = arith.constant 3 : i32
    %11 = arith.cmpi eq, %arg3, %c3_i32 : i32
    %12 = arith.extui %11 : i1 to i32
    %c0_i32_11 = arith.constant 0 : i32
    %13 = arith.cmpi ne, %12, %c0_i32_11 : i32
    scf.if %13 {
      %c0_12 = arith.constant 0 : index
      %c0_13 = arith.constant 0 : index
      %14 = vector.load %arg8[%c0_12, %c0_13] : memref<8x32xf32, #tpu.memory_space<vmem>>, vector<8x32xf32>
      %c0_14 = arith.constant 0 : index
      %c0_15 = arith.constant 0 : index
      %15 = vector.load %arg6[%c0_14, %c0_15] : memref<1x32xf32, #tpu.memory_space<vmem>>, vector<1x32xf32>
      %16 = vector.broadcast %15 : vector<1x32xf32> to vector<8x32xf32>
      %17 = arith.addf %14, %16 : vector<8x32xf32>
      %c0_16 = arith.constant 0 : index
      %c0_17 = arith.constant 0 : index
      %c0_18 = arith.constant 0 : index
      %18 = vector.load %arg7[%c0_16, %c0_17, %c0_18] : memref<1x8x32xf32, #tpu.memory_space<vmem>>, vector<1x8x32xf32>
      %19 = vector.shape_cast %18 : vector<1x8x32xf32> to vector<8x32xf32>
      %20 = vector.shape_cast %17 : vector<8x32xf32> to vector<1x8x32xf32>
      tpu.vector_store %arg7[%c0_16, %c0_17, %c0_18], %20 {strides = array<i32>} : memref<1x8x32xf32, #tpu.memory_space<vmem>>, vector<1x8x32xf32>,
    } else {
    }
    return
  }
  func.func @transform_0(%arg0: i32, %arg1: i32, %arg2: i32, %arg3: i32) -> (i32, i32, i32, i32) {
    %c0_i32 = arith.constant 0 : i32
    %c0_i32_0 = arith.constant 0 : i32
    return %arg0, %arg3, %arg1, %c0_i32 : i32, i32, i32, i32
  }
  func.func @transform_1(%arg0: i32, %arg1: i32, %arg2: i32, %arg3: i32) -> (i32, i32, i32) {
    %c0_i32 = arith.constant 0 : i32
    %c0_i32_0 = arith.constant 0 : i32
    return %arg3, %c0_i32, %arg2 : i32, i32, i32
  }
  func.func @transform_2(%arg0: i32, %arg1: i32, %arg2: i32, %arg3: i32) -> (i32, i32) {
    %c0_i32 = arith.constant 0 : i32
    %c0_i32_0 = arith.constant 0 : i32
    return %c0_i32, %arg2 : i32, i32
  }
  func.func @transform_3(%arg0: i32, %arg1: i32, %arg2: i32, %arg3: i32) -> (i32, i32, i32) {
    %c0_i32 = arith.constant 0 : i32
    return %arg0, %arg1, %arg2 : i32, i32, i32
  }
}

</mosaic_0001>

<bundles_post_ra>
// kernel: mul.9
= control target key start
LH: loop header
LB: loop body
LE: loop exit
PB: predicated region body
PF: predicated region fallthrough
CT: control target
= control target key end

     0   :  { %s34_s0 = inlined_call_operand.vmem [shape: f32[1,96], index: 0, kind: input, shape index: {}]   ;;  %s35_s1 = inlined_call_operand.vmem [shape: f32[1,96], index: 1, kind: input, shape index: {}]   ;;  %s36_s2 = inlined_call_operand.vmem [shape: f32[1,96], index: 2, kind: output, shape index: {}]  }
   0x1   :  { %v3_v0 = vld [vmem:[%s34_s0] sm:$0x1] }
   0x2   :  { %v4_v1 = vld [vmem:[%s35_s1] sm:$0x1] }
   0x3   :  { %v7_v2 = vmul.f32 %v4_v1, %v3_v0 }
   0x5   :  { %9 = vst [vmem:[%s36_s2] sm:$0x1] %v7_v2 }

// kernel: causal_self_attention.3
= control target key start
LH: loop header
LB: loop body
LE: loop exit
PB: predicated region body
PF: predicated region fallthrough
CT: control target
= control target key end

     0   :  { %vm24_vm0 = vcmask 261120   ;;  %vm54_vm1 = vcmask 785408   ;;  %s115_s1 = inlined_call_operand.vmem [shape: f32[32,96], index: 1, kind: input, shape index: {}]   ;;  %s116_s2 = inlined_call_operand.vmem [shape: f32[1,96], index: 2, kind: input, shape index: {}]   ;;  %s117_s0 = inlined_call_operand.vmem [shape: f32[16,32], index: 0, kind: input, shape index: {}]   ;;  %s118_s3 = inlined_call_operand.vmem [shape: f32[16,96], index: 3, kind: output, shape index: {}]  }
   0x1   :  { %v19_v0 = vld [vmem:[%s115_s1 + $0x18] sm:$0xff]  ;;  %v18_v1 = vld [vmem:[%s115_s1 + $0x10] sm:$0xff]  ;;  %v17_v2 = vld [vmem:[%s115_s1 + $0x8] sm:$0xff] }
   0x2   :  { %43 = vmatpush.msra.mxu0 %v19_v0  ;;  %63 = vmatpush.msra.mxu1 %v19_v0  ;;  %v16_v3 = vld [vmem:[%s115_s1] sm:$0xff]  ;;  %v15_v5 = vld [vmem:[%s117_s0 + $0x8] sm:$0xff] }
   0x3   :  { %v14_v4 = vld [vmem:[%s117_s0] sm:$0xff] }
   0x4   :  { %44 = vmatpush.msra.mxu0 %v18_v1  ;;  %64 = vmatpush.msra.mxu1 %v18_v1  ;;  %v67_v6 = vld [vmem:[%s116_s2] ss:$0 sm:$0xff] }
   0x6   :  { %45 = vmatpush.msra.mxu0 %v17_v2  ;;  %65 = vmatpush.msra.mxu1 %v17_v2 }
   0x8   :  { %46 = vmatpush.msra.mxu0 %v16_v3  ;;  %66 = vmatpush.msra.mxu1 %v16_v3 }
   0x9   :  { %61 = vmatmul.msk.f32.vlgmr.msra.gmra.mxu0 %vm24_vm0, %v14_v4  ;;  %62 = vmatmul.msk.f32.vlgmr.msra.gmra.mxu1 %vm24_vm0, %v15_v5 }
  0x86   :  { %v48_v7 = vpop.f32.mrf.mxu0  ;;  %v51_v8 = vpop.f32.mrf.mxu1 }
  0x87   :  { %v49_v9 = vadd.f32 %v67_v6, %v48_v7  ;;  %v52_v10 = vadd.f32 %v67_v6, %v51_v8 }
  0x89   :  { %55 = vst.msk [vmem:[%s118_s3] sm:$0xff] %vm54_vm1, %v49_v9 }
  0x8a   :  { %56 = vst.msk [vmem:[%s118_s3 + $0x8] sm:$0xff] %vm54_vm1, %v52_v10 }

// kernel: causal_self_attention.5
= control target key start
LH: loop header
LB: loop body
LE: loop exit
PB: predicated region body
PF: predicated region fallthrough
CT: control target
= control target key end

     0   :  { %8 = vsyncpa [#allocation4], 0  ;;  %s783_s0 = inlined_call_operand.vmem [shape: f32[2,4,8,8], index: 0, kind: input, shape index: {}]   ;;  %s784_s1 = inlined_call_operand.vmem [shape: f32[4,8,32], index: 1, kind: input, shape index: {}]   ;;  %s785_s2 = inlined_call_operand.vmem [shape: f32[1,32], index: 2, kind: input, shape index: {}]   ;;  %s786_s3 = inlined_call_operand.hbm [shape: f32[2,8,32], index: 3, kind: output, shape index: {}]  }
   0x1   :  { %10 = vsyncpa [#allocation4 + $0x1], 0  ;;  %s649_s12 = smov 0   ;;  %s651_s13 = smov 0  }
   0x2   :  { %s653_s14 = smov 0   ;;  %s655_s15 = smov 0  }
   0x3   :  { %s657_s16 = smov 0   ;;  %s659_s17 = smov 0  }
   0x4   :  { %s661_s18 = smov 0   ;;  %s663_s19 = smov 0  }
   0x5 LB: > { %s442_s20 = sadd.s32 4294967295, %s626_s19   ;;  %s443_s21 = sadd.s32 4294967294, %s626_s19   ;;  %s626_s19 = sphi %s663_s19, %s16_s19   ;;  %s622_s18 = sphi %s661_s18, %s798_s18   ;;  %s618_s17 = sphi %s659_s17, %s797_s17   ;;  %s614_s16 = sphi %s657_s16, %s796_s16   ;;  %s610_s15 = sphi %s655_s15, %s795_s15   ;;  %s606_s14 = sphi %s653_s14, %s794_s14   ;;  %s602_s13 = sphi %s651_s13, %s793_s13   ;;  %s598_s12 = sphi %s649_s12, %s792_s12  }
   0x6   : > { %s31_s22 = sadd.s32 1, %s618_s17  ;;  %s42_s23 = sadd.s32 1, %s622_s18 }
   0x7   : > { %p32_p0 = scmp.ge.s32.totalorder %s31_s22, 4  ;;  %p147_p1 = scmp.ne.s32.totalorder %s606_s14, %s602_s13 }
   0x8   : > { %p148_p2 = scmp.eq.s32.totalorder %s442_s20, 7  ;;  %p153_p4 = scmp.ne.s32.totalorder %s602_s13, %s598_s12 }
   0x9   : > { %s800_s22 = smov (%p32_p0, %s31_s22), 0  ;;  %s802_s23 = smov (!%p32_p0, %s42_s23), %s622_s18 }
   0xa   : > { %p698_p3 = por %p148_p2, %p147_p1  ;;  %p44_p5 = scmp.ge.s32.totalorder %s802_s23, 2 }
   0xb   : > { %p154_p6 = scmp.eq.s32.totalorder %s443_s21, 7  ;;  %p447_p7 = scmp.ge.s32.totalorder %s626_s19, 1 }
   0xc   : > { %p202_p8 = scmp.lt.s32.totalorder %s626_s19, 9  ;;  %s804_s23 = smov (%p44_p5, %s802_s23), 0 }
   0xd   : > { %789 = sst [smem:[#allocation6_spill]] %s804_s23  ;;  %p708_p9 = por %p154_p6, %p153_p4 }
   0xe   : > { %p203_p10 = pnand %p447_p7, %p202_p8  ;;  %s130_s26 = ssub.s32 %s622_s18, %s804_s23 }
   0xf   : > { %s137_s27 = sadd.s32 1, %s606_s14  ;;  %p135_p11 = scmp.eq.s32.totalorder %s130_s26, 0 }
  0x10   : > { %206 = sbr.rel (%p203_p10) target bundleno = 186 (0xba), region = 32  ;;  %s239_s29 = sand.u32 (!%p203_p10), 1, %s602_s13  }
  0x11   : > { %s716_s28 = scalar_select %p135_p11, %s606_s14, %s137_s27  }
  0x12   : > { %p242_p12 = scmp.lt.s32.totalorder (!%p203_p10), %s614_s16, 1  ;;  %s722_s30 = sshll.u32 (!%p203_p10), %s239_s29, 3 }
  0x13   : > { %p244_p13 = scmp.lt.s32.totalorder (!%p203_p10), %s610_s15, 3  ;;  %s241_s23 = scalar_lea.vmem (!%p203_p10), [#allocation3], %s722_s30 }
  0x14   : > { %p452_p0 = scmp.ne.s32.totalorder (!%p203_p10), %s610_s15, 0 }
  0x15   : > { %s243_s4 = scalar_select %p242_p12, %s614_s16, 1 }
  0x16   : > { %s245_s5 = scalar_select %p244_p13, %s610_s15, 3 }
  0x17   : > { %s449_s6 = sshll.u32 %s243_s4, 2  ;;  %266 = sbr.rel (%p452_p0) target bundleno = 30 (0x1e), region = 36 }
  0x18   : > { %s250_s7 = sadd.s32 %s449_s6, %s245_s5  ;;  %s451_s8 = sshll.u32 %s245_s5, 3 }
  0x19   : > { %s450_s9 = sshll.u32 %s250_s7, 3  ;;  %s259_s20 = scalar_lea.vmem %s784_s1, %s451_s8 }
  0x1a   : > { %s252_s27 = scalar_lea.vmem %s783_s0, %s450_s9 }
  0x1c   : > { %vm267_vm0 = vcmask 261120   ;;  %v628_v0 = vmov 0.0  }
  0x1d   : > { %268 = vst.msk [vmem:[#allocation2] sm:$0xff] %vm267_vm0, %v628_v0 }
  0x1e PF: > { %v271_v1 = vld [vmem:[%s259_s20] sm:$0xff]  ;;  %vm272_vm1 = vcmask 64512   ;;  %vm297_vm2 = vcmask 261120   ;;  %p454_p1 = scmp.ne.s32.totalorder %s610_s15, 3 }
  0x1f   : > { %v270_v2 = vld [vmem:[%s252_s27] sm:$0xff]  ;;  %291 = vmatpush.msra.mxu0 %v271_v1 }
  0x20   : > { %453 = vmatmul.msk.f32.vlgmr.msra.gmra.mxu0 %vm272_vm1, %v270_v2 }
  0x24   : > { %v269_v3 = vld [vmem:[#allocation2] sm:$0xff] }
  0x9c   : > { %302 = sbr.rel (%p454_p1) target bundleno = 171 (0xab), region = 40 }
  0x9d   : > { %v293_v4 = vpop.f32.mrf.mxu0 }
  0x9e   : > { %v296_v5 = vadd.f32 %v293_v4, %v269_v3 }
  0xa0   : > { %298 = vst.msk [vmem:[#allocation2] sm:$0xff] %vm297_vm2, %v296_v5 }
  0xa1   : > { %v531_v7 = vld [vmem:[%s785_s2] ss:$0 sm:$0xff] }
  0xa7   : > { %v303_v6 = vld [vmem:[#allocation2] sm:$0xff] }
  0xa8   : > { %v308_v8 = vadd.f32 %v531_v7, %v303_v6 }
  0xaa   : > { %309 = vst.msk [vmem:[%s241_s23] sm:$0xff] %vm297_vm2, %v308_v8 }
  0xab PF: > { %s456_s5 = sshll.u32 %s614_s16, 3  ;;  %s325_s9 = sshll.u32 %s241_s23, 4  ;;  %s326_s9 = int_to_ptr.vmem [resolvable:$true] %s325_s9 }
  0xac   : > { %s323_s8 = scalar_lea.hbm %s786_s3, %s456_s5  ;;  %s311_s10 = scalar_lea.sflag [#allocation4], %s239_s29 }
  0xad   : > { %s327_s15 = sshll.u32 %s323_s8, 4  ;;  %s552_s16 = scalar_lea.hbm %s786_s3, 16  ;;  %s328_s15 = int_to_ptr.hbm [resolvable:$true] %s327_s15 }
  0xae   : > { %s546_s11 = sshra.s32 %s328_s15, 4  ;;  %s547_s11 = int_to_ptr.hbm [resolvable:$true] %s546_s11 }
  0xaf   : > { %s548_s20 = scalar_lea.hbm %s547_s11, 8  ;;  %p553_p6 = scmp.lt.s32.totalorder %s547_s11, %s786_s3 }
  0xb0   : > { %p549_p2 = scmp.ne.s32.totalorder %s547_s11, %s548_s20  ;;  %p554_p7 = scmp.lt.s32.totalorder %s552_s16, %s548_s20 }
  0xb2   : > { %p550_p4 = pnand %p549_p2, %p698_p3  ;;  %p555_p8 = por %p554_p7, %p553_p6 }
  0xb4   : > { %p551_p5 = pneg %p550_p4 }
  0xb6   : > { %p556_p10 = pnand %p555_p8, %p551_p5 }
  0xb8   : > { %559 = shalt.err (!%p556_p10)
}
  0xb9   : > { %459 = dma.vmem_to_hbm [thread:$0]  (%p698_p3), %s326_s9, 128, %s328_s15, %s311_s10  }
  0xba PF: > { %p465_p11 = scmp.ge.s32.totalorder %s626_s19, 2  ;;  %s339_s23 = sand.u32 1, %s598_s12  }
  0xbb   : > { %s340_s29 = scalar_lea.sflag [#allocation4], %s339_s23 }
  0xbc   : > { %p462_p12 = pnand %p465_p11, %p708_p9 }
  0xbe   : > { %p463_p13 = pneg %p462_p12 }
  0xc0   : > { %593 = dma.done.wait (%p463_p13), %s340_s29, 128  }
  0xc1   : > { %595 = vsyncadd (%p463_p13), %s340_s29, 4294967168  ;;  %s16_s19 = sadd.s32 1, %s626_s19   ;;  %s791_s24 = sld [smem:[#allocation6_spill]] }
  0xc2   : > { %p13_p0 = scmp.ge.s32.totalorder %s16_s19, 10   ;;  %s792_s12 = smov %s602_s13 }
  0xc3   : > { %s793_s13 = smov %s606_s14  ;;  %s794_s14 = smov %s716_s28 }
  0xc4   : > { %s795_s15 = smov %s618_s17  ;;  %s796_s16 = smov %s622_s18 }
  0xc5   : > { %s797_s17 = smov %s800_s22  ;;  %15 = sbr.rel (!%p13_p0) target bundleno = 5 (0x5), region = 81 }
  0xc7   : > { %s798_s18 = smov %s791_s24 }
  0xca   :  { %346 = vsyncpa [#allocation4], 1 }
  0xcb   :  { %348 = vsyncpa [#allocation4 + $0x1], 1 }

// kernel: causal_self_attention.4
= control target key start
LH: loop header
LB: loop body
LE: loop exit
PB: predicated region body
PF: predicated region fallthrough
CT: control target
= control target key end

     0   :  { %s1133_s22 = smov 0   ;;  %s1135_s23 = smov 0   ;;  %s1270_s0 = inlined_call_operand.<no memory space> [shape: s32[1], index: 0, kind: input, shape index: {}, may-alias: {0,1}]   ;;  %s1271_s1 = inlined_call_operand.<no memory space> [shape: s32[1], index: 1, kind: input, shape index: {}, may-alias: {0,1}]   ;;  %s1272_s2 = inlined_call_operand.vmem [shape: f32[2,4,8,8], index: 2, kind: input, shape index: {}]   ;;  %s1273_s3 = inlined_call_operand.vmem [shape: f32[2,4,8,8], index: 3, kind: input, shape index: {}]   ;;  %s1274_s4 = inlined_call_operand.vmem [shape: f32[2,4,8,8], index: 4, kind: input, shape index: {}]   ;;  %s1275_s5 = inlined_call_operand.vmem [shape: f32[2,4,8,8], index: 5, kind: output, shape index: {}]  }
   0x1   :  { %10 = sst [smem:[#allocation6]] %s1270_s0  ;;  %s1137_s24 = smov 0  }
   0x2   :  { %11 = sst [smem:[#allocation7]] %s1271_s1 }
   0x3 LB: > { %s36_s0 = sadd.s32 1, %s1087_s23  ;;  %p985_p0 = scmp.ge.s32.totalorder %s1091_s24, 1  ;;  %s1091_s24 = sphi %s1137_s24, %s17_s24   ;;  %s1087_s23 = sphi %s1135_s23, %s1277_s23   ;;  %s1083_s22 = sphi %s1133_s22, %s1276_s22  }
   0x4   : > { %p38_p1 = scmp.ge.s32.totalorder %s36_s0, 2  ;;  %p234_p2 = scmp.lt.s32.totalorder %s1091_s24, 3 }
   0x6   : > { %s1279_s0 = smov (%p38_p1, %s36_s0), 0  ;;  %p235_p3 = pnand %p985_p0, %p234_p2 }
   0x7   : > { %s1151_s1 = sld [smem:[#allocation6]] (!%p235_p3)  ;;  %p302_p4 = scmp.lt.s32.totalorder (!%p235_p3), %s1083_s22, 1 }
   0x8   : > { %238 = sbr.rel (%p235_p3) target bundleno = 698 (0x2ba), region = 32  ;;  %s1153_s25 = sld [smem:[#allocation7]] (!%p235_p3) }
   0xd   : > { %s1281_s22 = smov (!%p302_p4, %s1083_s22), 1  ;;  %p306_p5 = scmp.lt.s32.totalorder %s1151_s1, 0 }
   0xe   : > { %s986_s26 = sshll.u32 %s1281_s22, 2  ;;  %p321_p6 = scmp.lt.s32.totalorder %s1153_s25, 0 }
   0xf   : > { %s307_s27 = scalar_select %p306_p5, %s1151_s1, 0 }
  0x10   : > { %s322_s28 = scalar_select %p321_p6, %s1153_s25, 0 }
  0x11   : > { %s310_s29 = sadd.s32 %s986_s26, %s307_s27  ;;  %p994_p7 = scmp.ne.s32.totalorder %s1153_s25, 0 }
  0x12   : > { %s987_s30 = sshll.u32 %s310_s29, 3  ;;  %s325_s6 = sadd.s32 %s986_s26, %s322_s28 }
  0x13   : > { %s1162_s9 = scalar_lea.vmem %s1272_s2, %s987_s30  ;;  %s989_s10 = sshll.u32 %s325_s6, 3 }
  0x14   : > { %s327_s13 = scalar_lea.vmem %s1273_s3, %s989_s10  ;;  %s1170_s16 = scalar_lea.vmem %s1274_s4, %s989_s10 }
  0x15   : > { %s1175_s19 = scalar_lea.vmem %s1275_s5, %s987_s30  ;;  %365 = sbr.rel (%p994_p7) target bundleno = 39 (0x27), region = 36 }
  0x1a   : > { %vm366_vm0 = vcmask 7168   ;;  %v1093_v0 = vmov -inf   ;;  %v1094_v1 = vmov 0.0   ;;  %vm375_vm1 = vcmask 64512  }
  0x1b   : > { %367 = vst.msk [vmem:[#allocation2] sm:$0xff] %vm366_vm0, %v1093_v0 }
  0x1c   : > { %368 = vst.msk [vmem:[#allocation2 + $0x8] sm:$0xff] %vm366_vm0, %v1093_v0 }
  0x1d   : > { %369 = vst.msk [vmem:[#allocation2 + $0x10] sm:$0xff] %vm366_vm0, %v1093_v0 }
  0x1e   : > { %370 = vst.msk [vmem:[#allocation2 + $0x18] sm:$0xff] %vm366_vm0, %v1093_v0 }
  0x1f   : > { %371 = vst.msk [vmem:[#allocation3] sm:$0xff] %vm366_vm0, %v1094_v1 }
  0x20   : > { %372 = vst.msk [vmem:[#allocation3 + $0x8] sm:$0xff] %vm366_vm0, %v1094_v1 }
  0x21   : > { %373 = vst.msk [vmem:[#allocation3 + $0x10] sm:$0xff] %vm366_vm0, %v1094_v1 }
  0x22   : > { %374 = vst.msk [vmem:[#allocation3 + $0x18] sm:$0xff] %vm366_vm0, %v1094_v1 }
  0x23   : > { %376 = vst.msk [vmem:[#allocation4] sm:$0xff] %vm375_vm1, %v1094_v1 }
  0x24   : > { %377 = vst.msk [vmem:[#allocation4 + $0x8] sm:$0xff] %vm375_vm1, %v1094_v1 }
  0x25   : > { %378 = vst.msk [vmem:[#allocation4 + $0x10] sm:$0xff] %vm375_vm1, %v1094_v1 }
  0x26   : > { %379 = vst.msk [vmem:[#allocation4 + $0x18] sm:$0xff] %vm375_vm1, %v1094_v1 }
  0x27 PF: > { %v384_v2 = vld [vmem:[%s327_s13] sm:$0xff]  ;;  %vm388_vm2 = vcmask 64512   ;;  %v386_v3 = vld [vmem:[%s327_s13 + $0x10] sm:$0xff]  ;;  %v385_v6 = vld [vmem:[%s327_s13 + $0x8] sm:$0xff]  ;;  %v493_v10 = vlaneseq  ;;  %s1003_s20 = sshll.u32 %s1151_s1, 3  ;;  %s1004_s21 = sshll.u32 %s1153_s25, 3 }
  0x28   : > { %v380_v4 = vld [vmem:[%s1162_s9] sm:$0xff]  ;;  %995 = vmatpush.xpose.msk.msra.mxu0 %vm388_vm2, %v384_v2  ;;  %999 = vmatpush.xpose.msk.msra.mxu2 %vm388_vm2, %v386_v3  ;;  %v382_v5 = vld [vmem:[%s1162_s9 + $0x10] sm:$0xff]  ;;  %v387_v7 = vld [vmem:[%s327_s13 + $0x18] sm:$0xff]  ;;  %v496_v13 = vstv %s1003_s20  ;;  %v1095_v29 = vmov 0   ;;  %vm596_vm4 = vcmask 7168   ;;  %p1009_p8 = scmp.ne.s32.totalorder %s1153_s25, %s1151_s1 }
  0x29   : > { %997 = vmatpush.xpose.msk.msra.mxu1 %vm388_vm2, %v385_v6  ;;  %1001 = vmatpush.xpose.msk.msra.mxu3 %vm388_vm2, %v387_v7  ;;  %v381_v8 = vld [vmem:[%s1162_s9 + $0x8] sm:$0xff]  ;;  %v383_v9 = vld [vmem:[%s1162_s9 + $0x18] sm:$0xff]  ;;  %v494_v11 = vshrl.u32 %v493_v10, 7  ;;  %v499_v12 = vand.u32 127, %v493_v10  ;;  %v501_v14 = vstv %s1004_s21  ;;  %v508_v30 = vld [vmem:[#allocation2] sm:$0xff] }
  0x2a   : > { %1041 = vset.pattern.permute.xlu0 %v1095_v29  ;;  %1040 = vset.pattern.permute.xlu2 %v1095_v29  ;;  %v510_v34 = vld [vmem:[#allocation2 + $0x10] sm:$0xff]  ;;  %v509_v36 = vld [vmem:[#allocation2 + $0x8] sm:$0xff]  ;;  %v511_v44 = vld [vmem:[#allocation2 + $0x18] sm:$0xff] }
  0x2b   : > { %996 = vmatmul.msk.f32.vlgmr.msra.gmra.mxu0 %vm388_vm2, %v380_v4  ;;  %1000 = vmatmul.msk.f32.vlgmr.msra.gmra.mxu2 %vm388_vm2, %v382_v5  ;;  %v497_v15 = vadd.s32 %v496_v13, %v494_v11  ;;  %v502_v16 = vadd.s32 %v501_v14, %v499_v12  ;;  %v631_v54 = vld [vmem:[%s1170_s16 + $0x10] sm:$0xff]  ;;  %v632_v55 = vld [vmem:[%s1170_s16 + $0x18] sm:$0xff]  ;;  %v629_v56 = vld [vmem:[%s1170_s16] sm:$0xff] }
  0x2c   : > { %998 = vmatmul.msk.f32.vlgmr.msra.gmra.mxu1 %vm388_vm2, %v381_v8  ;;  %1002 = vmatmul.msk.f32.vlgmr.msra.gmra.mxu3 %vm388_vm2, %v383_v9  ;;  %v630_v57 = vld [vmem:[%s1170_s16 + $0x8] sm:$0xff] }
  0x2d   : > { %vm503_vm3 = vcmp.le.s32.totalorder %v502_v16, %v497_v15  ;;  %1042 = vset.pattern.permute.xlu1 %v1095_v29  ;;  %697 = vmatpush.msrb.mxu2 %v631_v54 }
  0x2e   : > { %720 = vmatpush.msrb.mxu3 %v632_v55  ;;  %651 = vmatpush.msrb.mxu0 %v629_v56 }
  0x2f   : > { %674 = vmatpush.msrb.mxu1 %v630_v57 }
  0xa8   : > { %v412_v17 = vpop.f32.mrf.mxu0 }
  0xa9   : > { %v1192_v18 = vsel %vm503_vm3, %v412_v17, -1e+30  ;;  %v438_v20 = vpop.f32.mrf.mxu1  ;;  %v574_v17 = vld [vmem:[#allocation3 + $0x10] sm:$0xff] }
  0xaa   : > { %v512_v19 = vsel %vm388_vm2, %v1192_v18, -inf  ;;  %v1196_v21 = vsel %vm503_vm3, %v438_v20, -1e+30 }
  0xab   : > { %513 = vmax.xlane.f32.xlu1 %v512_v19  ;;  %v515_v25 = vsel %vm388_vm2, %v1196_v21, -inf }
  0xae   : > { %v464_v22 = vpop.f32.mrf.mxu2 }
  0xaf   : > { %v1198_v23 = vsel %vm503_vm3, %v464_v22, -1e+30  ;;  %v490_v26 = vpop.f32.mrf.mxu3  ;;  %v575_v22 = vld [vmem:[#allocation3 + $0x18] sm:$0xff] }
  0xb0   : > { %v518_v24 = vsel %vm388_vm2, %v1198_v23, -inf  ;;  %v1204_v27 = vsel %vm503_vm3, %v490_v26, -1e+30  ;;  %v603_v26 = vld [vmem:[#allocation4 + $0x10] sm:$0xff] }
  0xb1   : > { %519 = vmax.xlane.f32.xlu0 %v518_v24  ;;  %v521_v28 = vsel %vm388_vm2, %v1204_v27, -inf }
  0xb3   : > { %516 = vmax.xlane.f32.xlu1 %v515_v25 }
  0xb9   : > { %522 = vmax.xlane.f32.xlu0 %v521_v28  ;;  %v572_v28 = vld [vmem:[#allocation3] sm:$0xff] }
 0x11e   : > { %v514_v31 = vpop.xlane.xlu1 %513 }
 0x11f   : > { %v524_v32 = vmax.f32 %v508_v30, %v514_v31 }
 0x121   : > { %733 = vst.msk [vmem:[#allocation2] sm:$0xff] %vm596_vm4, %v524_v32  ;;  %542 = vperm.xlu0 %1041, %v524_v32   ;;  %v528_v33 = vsub.f32 %v508_v30, %v524_v32 }
 0x123   : > { %v532_v38 = vmul.f32 1.442695, %v528_v33  ;;  %v604_v33 = vld [vmem:[#allocation4 + $0x18] sm:$0xff] }
 0x124   : > { %v520_v35 = vpop.xlane.xlu0 %519 }
 0x125   : > { %v526_v37 = vmax.f32 %v510_v34, %v520_v35  ;;  %1043 = vpow2.f32 %v532_v38 }
 0x126   : > { %v517_v39 = vpop.xlane.xlu1 %516 }
 0x127   : > { %v530_v40 = vsub.f32 %v510_v34, %v526_v37  ;;  %735 = vst.msk [vmem:[#allocation2 + $0x10] sm:$0xff] %vm596_vm4, %v526_v37  ;;  %v525_v41 = vmax.f32 %v509_v36, %v517_v39  ;;  %552 = vperm.xlu2 %1040, %v526_v37   ;;  %v601_v37 = vld [vmem:[#allocation4] sm:$0xff] }
 0x129   : > { %v536_v42 = vmul.f32 1.442695, %v530_v40  ;;  %734 = vst.msk [vmem:[#allocation2 + $0x8] sm:$0xff] %vm596_vm4, %v525_v41  ;;  %547 = vperm.xlu1 %1042, %v525_v41   ;;  %v529_v43 = vsub.f32 %v509_v36, %v525_v41  ;;  %v573_v36 = vld [vmem:[#allocation3 + $0x8] sm:$0xff] }
 0x12b   : > { %1045 = vpow2.f32 %v536_v42  ;;  %v534_v47 = vmul.f32 1.442695, %v529_v43  ;;  %v1212_v48 = vpop.eup %1043 }
 0x12c   : > { %v523_v45 = vpop.xlane.xlu0 %522  ;;  %v576_v31 = vmul.f32 %v1212_v48, %v572_v28 }
 0x12d   : > { %v527_v46 = vmax.f32 %v511_v44, %v523_v45  ;;  %1047 = vpow2.f32 %v534_v47 }
 0x12f   : > { %736 = vst.msk [vmem:[#allocation2 + $0x18] sm:$0xff] %vm596_vm4, %v527_v46  ;;  %557 = vperm.xlu2 %1040, %v527_v46   ;;  %v531_v49 = vsub.f32 %v511_v44, %v527_v46  ;;  %v602_v46 = vld [vmem:[#allocation4 + $0x8] sm:$0xff] }
 0x131   : > { %v1046_v50 = vpop.eup %1045  ;;  %607 = vperm.xlu1 %1042, %v1212_v48   ;;  %v538_v51 = vmul.f32 1.442695, %v531_v49 }
 0x132   : > { %617 = vperm.xlu0 %1041, %v1046_v50  }
 0x133   : > { %v1215_v52 = vpop.eup %1047  ;;  %1049 = vpow2.f32 %v538_v51 }
 0x134   : > { %v577_v40 = vmul.f32 %v1215_v52, %v573_v36 }
 0x139   : > { %612 = vperm.xlu1 %1042, %v1215_v52   ;;  %v1050_v53 = vpop.eup %1049 }
 0x141   : > { %622 = vperm.xlu1 %1042, %v1050_v53  }
 0x181   : > { %v553_v58 = vpop.permute.xlu2 %552 }
 0x182   : > { %v562_v59 = vsub.f32 %v1198_v23, %v553_v58  ;;  %v579_v23 = vmul.f32 %v1050_v53, %v575_v22 }
 0x184   : > { %v568_v60 = vmul.f32 1.442695, %v562_v59 }
 0x186   : > { %1051 = vpow2.f32 %v568_v60 }
 0x189   : > { %v558_v61 = vpop.permute.xlu2 %557 }
 0x18a   : > { %v563_v62 = vsub.f32 %v1204_v27, %v558_v61 }
 0x18c   : > { %v1052_v63 = vpop.eup %1051  ;;  %v570_v0 = vmul.f32 1.442695, %v563_v62 }
 0x18d   : > { %1007 = vmatmul.msk.f32.vlgmr.msrb.gmra.mxu2 %vm388_vm2, %v1052_v63  ;;  %v586_v1 = vsel %vm388_vm2, %v1052_v63, 0.0 }
 0x18e   : > { %1053 = vpow2.f32 %v570_v0  ;;  %587 = vadd.xlane.f32.xlu0 %v586_v1 }
 0x193   : > { %v543_v2 = vpop.permute.xlu0 %542 }
 0x194   : > { %v1054_v3 = vpop.eup %1053  ;;  %v560_v4 = vsub.f32 %v1192_v18, %v543_v2  ;;  %v578_v18 = vmul.f32 %v1046_v50, %v574_v17 }
 0x195   : > { %1008 = vmatmul.msk.f32.vlgmr.msrb.gmra.mxu3 %vm388_vm2, %v1054_v3  ;;  %v589_v5 = vsel %vm388_vm2, %v1054_v3, 0.0 }
 0x196   : > { %v564_v6 = vmul.f32 1.442695, %v560_v4  ;;  %590 = vadd.xlane.f32.xlu1 %v589_v5 }
 0x198   : > { %1055 = vpow2.f32 %v564_v6 }
 0x19b   : > { %v548_v7 = vpop.permute.xlu1 %547 }
 0x19c   : > { %v561_v8 = vsub.f32 %v1196_v21, %v548_v7 }
 0x19e   : > { %v1056_v9 = vpop.eup %1055  ;;  %v566_v10 = vmul.f32 1.442695, %v561_v8 }
 0x19f   : > { %1005 = vmatmul.msk.f32.vlgmr.msrb.gmra.mxu0 %vm388_vm2, %v1056_v9  ;;  %v580_v11 = vsel %vm388_vm2, %v1056_v9, 0.0 }
 0x1a0   : > { %1057 = vpow2.f32 %v566_v10  ;;  %581 = vadd.xlane.f32.xlu2 %v580_v11 }
 0x1a3   : > { %v608_v14 = vpop.permute.xlu1 %607 }
 0x1a4   : > { %v618_v16 = vpop.permute.xlu0 %617  ;;  %v625_v41 = vmul.f32 %v608_v14, %v601_v37 }
 0x1a5   : > { %v627_v27 = vmul.f32 %v618_v16, %v603_v26 }
 0x1a6   : > { %v1058_v12 = vpop.eup %1057 }
 0x1a7   : > { %1006 = vmatmul.msk.f32.vlgmr.msrb.gmra.mxu1 %vm388_vm2, %v1058_v12  ;;  %v583_v13 = vsel %vm388_vm2, %v1058_v12, 0.0 }
 0x1a8   : > { %584 = vadd.xlane.f32.xlu2 %v583_v13 }
 0x1ab   : > { %v613_v15 = vpop.permute.xlu1 %612 }
 0x1ac   : > { %v626_v47 = vmul.f32 %v613_v15, %v602_v46 }
 0x1b3   : > { %v623_v19 = vpop.permute.xlu1 %622 }
 0x1b4   : > { %v628_v35 = vmul.f32 %v623_v19, %v604_v33 }
 0x201   : > { %v588_v20 = vpop.xlane.xlu0 %587 }
 0x202   : > { %v594_v21 = vadd.f32 %v588_v20, %v578_v18 }
 0x204   : > { %599 = vst.msk [vmem:[#allocation3 + $0x10] sm:$0xff] %vm596_vm4, %v594_v21 }
 0x209   : > { %v591_v24 = vpop.xlane.xlu1 %590 }
 0x20a   : > { %v595_v25 = vadd.f32 %v591_v24, %v579_v23 }
 0x20c   : > { %600 = vst.msk [vmem:[#allocation3 + $0x18] sm:$0xff] %vm596_vm4, %v595_v25 }
 0x210   : > { %v699_v29 = vpop.f32.mrf.mxu2 }
 0x211   : > { %v727_v30 = vadd.f32 %v699_v29, %v627_v27 }
 0x213   : > { %731 = vst.msk [vmem:[#allocation4 + $0x10] sm:$0xff] %vm388_vm2, %v727_v30  ;;  %v582_v32 = vpop.xlane.xlu2 %581 }
 0x214   : > { %v592_v34 = vadd.f32 %v582_v32, %v576_v31 }
 0x216   : > { %597 = vst.msk [vmem:[#allocation3] sm:$0xff] %vm596_vm4, %v592_v34 }
 0x218   : > { %v722_v38 = vpop.f32.mrf.mxu3 }
 0x219   : > { %v728_v39 = vadd.f32 %v722_v38, %v628_v35 }
 0x21b   : > { %732 = vst.msk [vmem:[#allocation4 + $0x18] sm:$0xff] %vm388_vm2, %v728_v39  ;;  %v585_v42 = vpop.xlane.xlu2 %584 }
 0x21c   : > { %v593_v43 = vadd.f32 %v585_v42, %v577_v40  ;;  %v653_v44 = vpop.f32.mrf.mxu0 }
 0x21d   : > { %v725_v45 = vadd.f32 %v653_v44, %v625_v41 }
 0x21e   : > { %598 = vst.msk [vmem:[#allocation3 + $0x8] sm:$0xff] %vm596_vm4, %v593_v43 }
 0x21f   : > { %729 = vst.msk [vmem:[#allocation4] sm:$0xff] %vm388_vm2, %v725_v45 }
 0x223   : > { %740 = sbr.rel (%p1009_p8) target bundleno = 698 (0x2ba), region = 40 }
 0x224   : > { %v676_v48 = vpop.f32.mrf.mxu1 }
 0x225   : > { %v726_v49 = vadd.f32 %v676_v48, %v626_v47 }
 0x227   : > { %730 = vst.msk [vmem:[#allocation4 + $0x8] sm:$0xff] %vm388_vm2, %v726_v49 }
 0x228   : > { %v747_v50 = vld [vmem:[#allocation3 + $0x10] sm:$0xff]  ;;  %v745_v51 = vld [vmem:[#allocation3] sm:$0xff]  ;;  %v1096_v52 = vmov 0   ;;  %v748_v53 = vld [vmem:[#allocation3 + $0x18] sm:$0xff] }
 0x229   : > { %1060 = vset.pattern.permute.xlu1 %v1096_v52  ;;  %1059 = vset.pattern.permute.xlu0 %v1096_v52  ;;  %v746_v54 = vld [vmem:[#allocation3 + $0x8] sm:$0xff]  ;;  %v743_v9 = vld [vmem:[#allocation4 + $0x10] sm:$0xff]  ;;  %v741_v14 = vld [vmem:[#allocation4] sm:$0xff] }
 0x22a   : > { %761 = vperm.xlu1 %1060, %v747_v50   ;;  %751 = vperm.xlu0 %1059, %v745_v51   ;;  %v744_v32 = vld [vmem:[#allocation4 + $0x18] sm:$0xff] }
 0x22e   : > { %v742_v36 = vld [vmem:[#allocation4 + $0x8] sm:$0xff] }
 0x232   : > { %766 = vperm.xlu1 %1060, %v748_v53   ;;  %756 = vperm.xlu0 %1059, %v746_v54  }
 0x29c   : > { %v762_v55 = vpop.permute.xlu1 %761  ;;  %v752_v56 = vpop.permute.xlu0 %751 }
 0x29d   : > { %1061 = vrcp.f32 %v762_v55  ;;  %v810_v0 = vand.u32 2147483648, %v762_v55  ;;  %v808_v3 = vand.u32 2147483647, %v762_v55  ;;  %v780_v4 = vand.u32 2147483648, %v752_v56 }
 0x29e   : > { %1063 = vrcp.f32 %v752_v56  ;;  %v778_v6 = vand.u32 2147483647, %v752_v56  ;;  %vm804_vm7 = vweird.f32 %v762_v55  ;;  %vm774_vm9 = vweird.f32 %v752_v56 }
 0x29f   : > { %v811_v10 = vor.u32 1.1754944e-38, %v810_v0  ;;  %vm809_vm10 = vcmp.eq.f32.partialorder %v808_v3, 8.507059e+37  ;;  %v781_v15 = vor.u32 1.1754944e-38, %v780_v4 }
 0x2a0   : > { %vm779_vm12 = vcmp.eq.f32.partialorder %v778_v6, 8.507059e+37 }
 0x2a3   : > { %v1062_v57 = vpop.eup %1061 }
 0x2a4   : > { %v1064_v58 = vpop.eup %1063  ;;  %v800_v59 = vmul.f32 %v1062_v57, %v762_v55  ;;  %v767_v60 = vpop.permute.xlu1 %766  ;;  %vm805_vm5 = vweird.f32 %v1062_v57 }
 0x2a5   : > { %v1246_v61 = vpop.permute.xlu0 %756  ;;  %v770_v62 = vmul.f32 %v1064_v58, %v752_v56  ;;  %1065 = vrcp.f32 %v767_v60  ;;  %vm775_vm6 = vweird.f32 %v1064_v58  ;;  %vm806_vm8 = vmor %vm804_vm7, %vm805_vm5  ;;  %v825_v24 = vand.u32 2147483648, %v767_v60 }
 0x2a6   : > { %v801_v63 = vsub.f32 1.0, %v800_v59  ;;  %1067 = vrcp.f32 %v1246_v61  ;;  %vm776_vm11 = vmor %vm774_vm9, %vm775_vm6  ;;  %v823_v27 = vand.u32 2147483647, %v767_v60  ;;  %v795_v28 = vand.u32 2147483648, %v1246_v61 }
 0x2a7   : > { %v771_v1 = vsub.f32 1.0, %v770_v62  ;;  %v793_v30 = vand.u32 2147483647, %v1246_v61  ;;  %vm819_vm15 = vweird.f32 %v767_v60  ;;  %v826_v33 = vor.u32 1.1754944e-38, %v825_v24 }
 0x2a8   : > { %v802_v2 = vmul.f32 %v1062_v57, %v801_v63  ;;  %vm789_vm1 = vweird.f32 %v1246_v61  ;;  %vm824_vm3 = vcmp.eq.f32.partialorder %v823_v27, 8.507059e+37  ;;  %v796_v37 = vor.u32 1.1754944e-38, %v795_v28 }
 0x2a9   : > { %v772_v5 = vmul.f32 %v1064_v58, %v771_v1  ;;  %vm794_vm5 = vcmp.eq.f32.partialorder %v793_v30, 8.507059e+37 }
 0x2aa   : > { %v803_v7 = vadd.f32 %v1062_v57, %v802_v2 }
 0x2ab   : > { %v1066_v8 = vpop.eup %1065  ;;  %v773_v11 = vadd.f32 %v1064_v58, %v772_v5 }
 0x2ac   : > { %v1068_v12 = vpop.eup %1067  ;;  %v807_v13 = vsel %vm806_vm8, %v1062_v57, %v803_v7  ;;  %v815_v16 = vmul.f32 %v1066_v8, %v767_v60  ;;  %vm820_vm13 = vweird.f32 %v1066_v8 }
 0x2ad   : > { %v812_v17 = vsel %vm809_vm10, %v811_v10, %v807_v13  ;;  %v777_v18 = vsel %vm776_vm11, %v1064_v58, %v773_v11  ;;  %v785_v19 = vmul.f32 %v1068_v12, %v1246_v61  ;;  %vm790_vm14 = vweird.f32 %v1068_v12  ;;  %vm821_vm0 = vmor %vm819_vm15, %vm820_vm13 }
 0x2ae   : > { %v813_v20 = vmul.f32 %v812_v17, %v743_v9  ;;  %v782_v21 = vsel %vm779_vm12, %v781_v15, %v777_v18  ;;  %v816_v22 = vsub.f32 1.0, %v815_v16  ;;  %vm791_vm4 = vmor %vm789_vm1, %vm790_vm14 }
 0x2af   : > { %v783_v23 = vmul.f32 %v782_v21, %v741_v14  ;;  %v786_v25 = vsub.f32 1.0, %v785_v19 }
 0x2b0   : > { %831 = vst.msk [vmem:[%s1175_s19 + $0x10] sm:$0xff] %vm388_vm2, %v813_v20  ;;  %v817_v26 = vmul.f32 %v1066_v8, %v816_v22 }
 0x2b1   : > { %829 = vst.msk [vmem:[%s1175_s19] sm:$0xff] %vm388_vm2, %v783_v23  ;;  %v787_v29 = vmul.f32 %v1068_v12, %v786_v25 }
 0x2b2   : > { %v818_v31 = vadd.f32 %v1066_v8, %v817_v26 }
 0x2b3   : > { %v788_v34 = vadd.f32 %v1068_v12, %v787_v29 }
 0x2b4   : > { %v822_v35 = vsel %vm821_vm0, %v1066_v8, %v818_v31 }
 0x2b5   : > { %v827_v38 = vsel %vm824_vm3, %v826_v33, %v822_v35  ;;  %v792_v39 = vsel %vm791_vm4, %v1068_v12, %v788_v34 }
 0x2b6   : > { %v828_v40 = vmul.f32 %v827_v38, %v744_v32  ;;  %v797_v41 = vsel %vm794_vm5, %v796_v37, %v792_v39 }
 0x2b7   : > { %v798_v42 = vmul.f32 %v797_v41, %v742_v36 }
 0x2b8   : > { %832 = vst.msk [vmem:[%s1175_s19 + $0x18] sm:$0xff] %vm388_vm2, %v828_v40 }
 0x2b9   : > { %830 = vst.msk [vmem:[%s1175_s19 + $0x8] sm:$0xff] %vm388_vm2, %v798_v42 }
 0x2ba PF: > { %s17_s24 = sadd.s32 1, %s1091_s24   ;;  %s1276_s22 = smov %s1087_s23 }
 0x2bb   : > { %p14_p9 = scmp.ge.s32.totalorder %s17_s24, 4   ;;  %s1277_s23 = smov %s1279_s0 }
 0x2bd   :  { %16 = sbr.rel (!%p14_p9) target bundleno = 3 (0x3), region = 76 }

</bundles_post_ra>
